<compile_context>
chip_gen: v7x
topology: tpu7x:2x2x1
jax: 0.10.0
libtpu: 0.0.40
codegen_flags: <defaults>
</compile_context>

<pallas_src>
import functools

import jax
import jax.numpy as jnp
from jax import lax
from jax.experimental import pallas as pl
from jax.experimental.pallas import tpu as pltpu

# ----------------------------------------------------------------------------
# Small synthetic shapes consistent with the module structure.
# (Real module: F = 512*17*28 = 243712, HID = 2048, T = 24, num_layers = 3.)
# ----------------------------------------------------------------------------
B, C, T, HSP, WSP = 1, 8, 16, 4, 8
F = C * HSP * WSP          # 256  (flattened "512*17*28" analogue)
HID = 128                  # LSTM hidden size ("2048" analogue)
NUM_LAYERS = 3
LN_EPS = 1e-5

TK = 128                   # reduction-axis tile (multiple of 128)
TN = 128                   # output-axis tile for the `up` projection


# ----------------------------------------------------------------------------
# Kernel 1: `down` = Linear(F -> HID) + LayerNorm(HID) + ReLU, K-tiled.
#   grid=(F//TK,): x:(T,TK) bf16, w:(TK,HID) bf16, acc:(T,HID) f32 scratch.
# ----------------------------------------------------------------------------
def down_kernel(x_ref, w_ref, b_ref, g_ref, bt_ref, out_ref, acc_ref):
    k = pl.program_id(0)

    @pl.when(k == 0)
    def _():
        acc_ref[...] = jnp.zeros_like(acc_ref)

    acc_ref[...] += jnp.dot(x_ref[...], w_ref[...],
                            preferred_element_type=jnp.float32)

    @pl.when(k == pl.num_programs(0) - 1)
    def _():
        y = acc_ref[...] + b_ref[...]
        inv_n = 1.0 / y.shape[-1]
        mean = jnp.sum(y, axis=-1, keepdims=True) * inv_n
        var = jnp.sum(y * y, axis=-1, keepdims=True) * inv_n - mean * mean
        yn = (y - mean) * lax.rsqrt(jnp.maximum(var, 0.0) + LN_EPS)
        yn = yn * g_ref[...] + bt_ref[...]
        out_ref[...] = jnp.maximum(yn, 0.0).astype(out_ref.dtype)


def linear_ln_relu_down(x_bf16, w_bf16, b, gamma, beta, *, tk=TK):
    t, k_dim = x_bf16.shape
    hid = w_bf16.shape[1]
    return pl.pallas_call(
        down_kernel,
        out_shape=jax.ShapeDtypeStruct((t, hid), jnp.bfloat16),
        grid_spec=pltpu.PrefetchScalarGridSpec(
            num_scalar_prefetch=0,
            grid=(k_dim // tk,),
            in_specs=[
                pl.BlockSpec((t, tk), lambda k: (0, k)),
                pl.BlockSpec((tk, hid), lambda k: (k, 0)),
                pl.BlockSpec((1, hid), lambda k: (0, 0)),
                pl.BlockSpec((1, hid), lambda k: (0, 0)),
                pl.BlockSpec((1, hid), lambda k: (0, 0)),
            ],
            out_specs=pl.BlockSpec((t, hid), lambda k: (0, 0)),
            scratch_shapes=[pltpu.VMEM((t, hid), jnp.float32)],
        ),
        compiler_params=pltpu.CompilerParams(
            dimension_semantics=("arbitrary",)),
        cost_estimate=pl.CostEstimate(
            flops=2 * t * k_dim * hid,
            transcendentals=0,
            bytes_accessed=int(k_dim * hid * 2 + t * k_dim * 2 + t * hid * 2)),
    )(x_bf16, w_bf16, b, gamma, beta)


# ----------------------------------------------------------------------------
# Kernel 2: generic K-tiled matmul + bias (used for the hoisted x @ W_ih of
# each LSTM layer).  out:(T, 4H) f32.
# ----------------------------------------------------------------------------
def matmul_bias_kernel(x_ref, w_ref, b_ref, out_ref, acc_ref):
    k = pl.program_id(0)

    @pl.when(k == 0)
    def _():
        acc_ref[...] = jnp.zeros_like(acc_ref)

    acc_ref[...] += jnp.dot(x_ref[...], w_ref[...],
                            preferred_element_type=jnp.float32)

    @pl.when(k == pl.num_programs(0) - 1)
    def _():
        out_ref[...] = acc_ref[...] + b_ref[...]


def matmul_bias(x_bf16, w_bf16, b, *, tk=TK):
    t, k_dim = x_bf16.shape
    n = w_bf16.shape[1]
    return pl.pallas_call(
        matmul_bias_kernel,
        out_shape=jax.ShapeDtypeStruct((t, n), jnp.float32),
        grid_spec=pltpu.PrefetchScalarGridSpec(
            num_scalar_prefetch=0,
            grid=(k_dim // tk,),
            in_specs=[
                pl.BlockSpec((t, tk), lambda k: (0, k)),
                pl.BlockSpec((tk, n), lambda k: (k, 0)),
                pl.BlockSpec((1, n), lambda k: (0, 0)),
            ],
            out_specs=pl.BlockSpec((t, n), lambda k: (0, 0)),
            scratch_shapes=[pltpu.VMEM((t, n), jnp.float32)],
        ),
        compiler_params=pltpu.CompilerParams(
            dimension_semantics=("arbitrary",)),
        cost_estimate=pl.CostEstimate(
            flops=2 * t * k_dim * n,
            transcendentals=0,
            bytes_accessed=int(k_dim * n * 2 + t * k_dim * 2 + t * n * 4)),
    )(x_bf16, w_bf16, b)


# ----------------------------------------------------------------------------
# Kernel 3: LSTM recurrence only (batch = 1, zero initial state).
#   gates_x:(T, 4H) f32 (precomputed x@W_ih + b), whh:(H, 4H) bf16 resident.
#   h / c carried as fori_loop carry values (vregs), loop unrolled (T fixed).
#   PyTorch gate order: i, f, g, o.
# ----------------------------------------------------------------------------
def lstm_recurrence_kernel(gx_ref, whh_ref, out_ref):
    t_steps, four_h = gx_ref.shape
    h_dim = four_h // 4

    def step(t, carry):
        h, c = carry                                            # (1, H) f32
        gates = gx_ref[pl.ds(t, 1), :] + jnp.dot(
            h.astype(jnp.bfloat16), whh_ref[...],
            preferred_element_type=jnp.float32)                 # (1, 4H) f32
        i_g = jax.nn.sigmoid(gates[:, 0:h_dim])
        f_g = jax.nn.sigmoid(gates[:, h_dim:2 * h_dim])
        g_g = jnp.tanh(gates[:, 2 * h_dim:3 * h_dim])
        o_g = jax.nn.sigmoid(gates[:, 3 * h_dim:4 * h_dim])
        c_new = f_g * c + i_g * g_g
        h_new = o_g * jnp.tanh(c_new)
        out_ref[pl.ds(t, 1), :] = h_new.astype(out_ref.dtype)
        return (h_new, c_new)

    h0 = jnp.zeros((1, h_dim), jnp.float32)
    c0 = jnp.zeros((1, h_dim), jnp.float32)
    lax.fori_loop(0, t_steps, step, (h0, c0), unroll=True)


def lstm_recurrence(gates_x, whh_bf16):
    t, four_h = gates_x.shape
    h = four_h // 4
    return pl.pallas_call(
        lstm_recurrence_kernel,
        out_shape=jax.ShapeDtypeStruct((t, h), jnp.bfloat16),
    )(gates_x, whh_bf16)


# ----------------------------------------------------------------------------
# Kernel 4a: `up` matmul, N-tiled, also accumulating per-row sum / sum-of-sq
#            across the N grid (for the LayerNorm over the full F row).
# ----------------------------------------------------------------------------
def up_matmul_stats_kernel(x_ref, w_ref, b_ref, y_ref, sum_ref, ssq_ref):
    j = pl.program_id(0)

    @pl.when(j == 0)
    def _():
        sum_ref[...] = jnp.zeros_like(sum_ref)
        ssq_ref[...] = jnp.zeros_like(ssq_ref)

    y = jnp.dot(x_ref[...], w_ref[...],
                preferred_element_type=jnp.float32) + b_ref[...]
    y_ref[...] = y
    sum_ref[...] += jnp.sum(y, axis=-1, keepdims=True)
    ssq_ref[...] += jnp.sum(y * y, axis=-1, keepdims=True)


def up_matmul_stats(x_bf16, w_bf16, b, *, tn=TN):
    t, hid = x_bf16.shape
    n = w_bf16.shape[1]
    return pl.pallas_call(
        up_matmul_stats_kernel,
        out_shape=(jax.ShapeDtypeStruct((t, n), jnp.float32),
                   jax.ShapeDtypeStruct((t, 1), jnp.float32),
                   jax.ShapeDtypeStruct((t, 1), jnp.float32)),
        grid_spec=pltpu.PrefetchScalarGridSpec(
            num_scalar_prefetch=0,
            grid=(n // tn,),
            in_specs=[
                pl.BlockSpec((t, hid), lambda j: (0, 0)),
                pl.BlockSpec((hid, tn), lambda j: (0, j)),
                pl.BlockSpec((1, tn), lambda j: (0, j)),
            ],
            out_specs=(pl.BlockSpec((t, tn), lambda j: (0, j)),
                       pl.BlockSpec((t, 1), lambda j: (0, 0)),
                       pl.BlockSpec((t, 1), lambda j: (0, 0))),
        ),
        compiler_params=pltpu.CompilerParams(
            dimension_semantics=("arbitrary",)),
        cost_estimate=pl.CostEstimate(
            flops=2 * t * hid * n,
            transcendentals=0,
            bytes_accessed=int(hid * n * 2 + t * hid * 2 + t * n * 4)),
    )(x_bf16, w_bf16, b)


# ----------------------------------------------------------------------------
# Kernel 4b: LayerNorm finalize + gamma/beta + ReLU over (T, F), N-tiled,
#            "parallel" (independent output tiles -> dual-TC on v7x).
# ----------------------------------------------------------------------------
def ln_relu_kernel(y_ref, sum_ref, ssq_ref, g_ref, bt_ref, out_ref, *, inv_n):
    mean = sum_ref[...] * inv_n
    var = ssq_ref[...] * inv_n - mean * mean
    inv = lax.rsqrt(jnp.maximum(var, 0.0) + LN_EPS)
    yn = (y_ref[...] - mean) * inv * g_ref[...] + bt_ref[...]
    out_ref[...] = jnp.maximum(yn, 0.0)


def ln_relu(y, row_sum, row_ssq, gamma, beta, *, tn=TN):
    t, n = y.shape
    kern = functools.partial(ln_relu_kernel, inv_n=1.0 / n)
    return pl.pallas_call(
        kern,
        out_shape=jax.ShapeDtypeStruct((t, n), jnp.float32),
        grid_spec=pltpu.PrefetchScalarGridSpec(
            num_scalar_prefetch=0,
            grid=(n // tn,),
            in_specs=[
                pl.BlockSpec((t, tn), lambda j: (0, j)),
                pl.BlockSpec((t, 1), lambda j: (0, 0)),
                pl.BlockSpec((t, 1), lambda j: (0, 0)),
                pl.BlockSpec((1, tn), lambda j: (0, j)),
                pl.BlockSpec((1, tn), lambda j: (0, j)),
            ],
            out_specs=pl.BlockSpec((t, tn), lambda j: (0, j)),
        ),
        compiler_params=pltpu.CompilerParams(
            dimension_semantics=("parallel",)),
    )(y, row_sum, row_ssq, gamma, beta)


# ----------------------------------------------------------------------------
# Full LSTM-module forward (glue in plain JAX, hot path in Pallas kernels).
# ----------------------------------------------------------------------------
def lstm_module_forward(x_3d, params):
    # x_3d: (B=1, C, T, Hsp, Wsp)  ==  PyTorch NC T H W
    x = jnp.transpose(x_3d, (0, 2, 1, 3, 4))          # (1, T, C, Hsp, Wsp)
    x2d = x.reshape(T, F).astype(jnp.bfloat16)        # (T, F), batch of 1

    # down: Linear(F -> HID) + LayerNorm + ReLU   (K-tiled, fused epilogue)
    x2d = linear_ln_relu_down(x2d, params["down_w"], params["down_b"],
                              params["down_g"], params["down_bt"])   # bf16

    # LSTM stack (batch_first, batch=1, zero initial state).
    # Per layer: hoisted batched x@W_ih, then the serial h@W_hh recurrence.
    for l in range(NUM_LAYERS):
        gates_x = matmul_bias(x2d, params["lstm_wih"][l], params["lstm_b"][l])
        x2d = lstm_recurrence(gates_x, params["lstm_whh"][l])        # bf16

    # up: Linear(HID -> F) + LayerNorm + ReLU   (N-tiled matmul + 2-pass LN)
    y, row_sum, row_ssq = up_matmul_stats(x2d, params["up_w"], params["up_b"])
    x_up = ln_relu(y, row_sum, row_ssq, params["up_g"], params["up_bt"])

    x_out = x_up.reshape(1, T, C, HSP, WSP)
    return jnp.transpose(x_out, (0, 2, 1, 3, 4))      # (1, C, T, Hsp, Wsp)


def init_params(key):
    ks = jax.random.split(key, 8)
    scale = 0.02
    p = {
        # down: PyTorch Linear weight is (HID, F); stored transposed (F, HID)
        "down_w": (scale * jax.random.normal(ks[0], (F, HID), jnp.float32)
                   ).astype(jnp.bfloat16),
        "down_b": scale * jax.random.normal(ks[1], (1, HID), jnp.float32),
        "down_g": jnp.ones((1, HID), jnp.float32),
        "down_bt": jnp.zeros((1, HID), jnp.float32),
        # up
        "up_w": (scale * jax.random.normal(ks[2], (HID, F), jnp.float32)
                 ).astype(jnp.bfloat16),
        "up_b": scale * jax.random.normal(ks[3], (1, F), jnp.float32),
        "up_g": jnp.ones((1, F), jnp.float32),
        "up_bt": jnp.zeros((1, F), jnp.float32),
        "lstm_wih": [],
        "lstm_whh": [],
        "lstm_b": [],
    }
    for l in range(NUM_LAYERS):
        in_dim = HID  # every layer's input dim == HID (down output / prev h)
        kw = jax.random.split(ks[4 + l], 4)
        # PyTorch: weight_ih (4H, in), weight_hh (4H, H); stored transposed.
        p["lstm_wih"].append(
            (scale * jax.random.normal(kw[0], (in_dim, 4 * HID), jnp.float32)
             ).astype(jnp.bfloat16))
        p["lstm_whh"].append(
            (scale * jax.random.normal(kw[1], (HID, 4 * HID), jnp.float32)
             ).astype(jnp.bfloat16))
        b_ih = scale * jax.random.normal(kw[2], (1, 4 * HID), jnp.float32)
        b_hh = scale * jax.random.normal(kw[3], (1, 4 * HID), jnp.float32)
        p["lstm_b"].append(b_ih + b_hh)   # PyTorch adds both biases
    return p


if __name__ == "__main__":
    key = jax.random.PRNGKey(0)
    pkey, xkey = jax.random.split(key)
    params = init_params(pkey)

    x_3d = jax.random.normal(xkey, (B, C, T, HSP, WSP), jnp.float32)

    out = lstm_module_forward(x_3d, params)
    out = jax.block_until_ready(out)

    assert out.shape == (1, C, T, HSP, WSP), out.shape
    assert bool(jnp.all(jnp.isfinite(out)))
    print("KERNEL_OK")
</pallas_src>

<mosaic_0001>
module attributes {stable_mosaic.version = 11 : i64} {
  func.func @down_kernel(%arg0: i32, %arg1: memref<16x128xbf16, #tpu.memory_space<vmem>>, %arg2: memref<128x128xbf16, #tpu.memory_space<vmem>>, %arg3: memref<1x128xf32, #tpu.memory_space<vmem>>, %arg4: memref<1x128xf32, #tpu.memory_space<vmem>>, %arg5: memref<1x128xf32, #tpu.memory_space<vmem>>, %arg6: memref<16x128xbf16, #tpu.memory_space<vmem>>, %arg7: memref<16x128xf32, #tpu.memory_space<vmem>>) attributes {dimension_semantics = [#tpu.dimension_semantics<arbitrary>], iteration_bounds = array<i64: 2>, scalar_prefetch = 0 : i64, scratch_operands = 1 : i64, tpu.core_type = #tpu.core_type<tc>, window_params = [{transform_indices = @transform_0, window_bounds = array<i64: 16, 128>}, {transform_indices = @transform_1, window_bounds = array<i64: 128, 128>}, {pipeline_mode = #tpu.pipeline_mode<synchronous>, transform_indices = @transform_2, window_bounds = array<i64: 1, 128>}, {pipeline_mode = #tpu.pipeline_mode<synchronous>, transform_indices = @transform_3, window_bounds = array<i64: 1, 128>}, {pipeline_mode = #tpu.pipeline_mode<synchronous>, transform_indices = @transform_4, window_bounds = array<i64: 1, 128>}, {pipeline_mode = #tpu.pipeline_mode<synchronous>, transform_indices = @transform_5, window_bounds = array<i64: 16, 128>}]} {
    %c0_i32 = arith.constant 0 : i32
    %0 = arith.cmpi eq, %arg0, %c0_i32 : i32
    %1 = arith.extui %0 : i1 to i32
    %c0_i32_0 = arith.constant 0 : i32
    %2 = arith.cmpi ne, %1, %c0_i32_0 : i32
    scf.if %2 {
      %cst_9 = arith.constant 0.000000e+00 : f32
      %12 = vector.broadcast %cst_9 : f32 to vector<16x128xf32>
      %c0_10 = arith.constant 0 : index
      %c0_11 = arith.constant 0 : index
      %13 = vector.load %arg7[%c0_10, %c0_11] : memref<16x128xf32, #tpu.memory_space<vmem>>, vector<16x128xf32>
      tpu.vector_store %arg7[%c0_10, %c0_11], %12 {strides = array<i32>} : memref<16x128xf32, #tpu.memory_space<vmem>>, vector<16x128xf32>,
    } else {
    }
    %c0 = arith.constant 0 : index
    %c0_1 = arith.constant 0 : index
    %3 = vector.load %arg7[%c0, %c0_1] : memref<16x128xf32, #tpu.memory_space<vmem>>, vector<16x128xf32>
    %c0_2 = arith.constant 0 : index
    %c0_3 = arith.constant 0 : index
    %4 = vector.load %arg1[%c0_2, %c0_3] : memref<16x128xbf16, #tpu.memory_space<vmem>>, vector<16x128xbf16>
    %c0_4 = arith.constant 0 : index
    %c0_5 = arith.constant 0 : index
    %5 = vector.load %arg2[%c0_4, %c0_5] : memref<128x128xbf16, #tpu.memory_space<vmem>>, vector<128x128xbf16>
    %cst = arith.constant dense<0.000000e+00> : vector<16x128xf32>
    %6 = tpu.matmul %4, %5, %cst {dimension_numbers = #tpu.dot_dimension_numbers<[1], [0], [0], [1], [0, 0, 1, 1], [], []>} : vector<16x128xbf16>, vector<128x128xbf16>, vector<16x128xf32> -> vector<16x128xf32>
    %7 = arith.addf %3, %6 : vector<16x128xf32>
    %c0_6 = arith.constant 0 : index
    %c0_7 = arith.constant 0 : index
    %8 = vector.load %arg7[%c0_6, %c0_7] : memref<16x128xf32, #tpu.memory_space<vmem>>, vector<16x128xf32>
    tpu.vector_store %arg7[%c0_6, %c0_7], %7 {strides = array<i32>} : memref<16x128xf32, #tpu.memory_space<vmem>>, vector<16x128xf32>,
    %c1_i32 = arith.constant 1 : i32
    %9 = arith.cmpi eq, %arg0, %c1_i32 : i32
    %10 = arith.extui %9 : i1 to i32
    %c0_i32_8 = arith.constant 0 : i32
    %11 = arith.cmpi ne, %10, %c0_i32_8 : i32
    scf.if %11 {
      %c0_9 = arith.constant 0 : index
      %c0_10 = arith.constant 0 : index
      %12 = vector.load %arg7[%c0_9, %c0_10] : memref<16x128xf32, #tpu.memory_space<vmem>>, vector<16x128xf32>
      %c0_11 = arith.constant 0 : index
      %c0_12 = arith.constant 0 : index
      %13 = vector.load %arg3[%c0_11, %c0_12] : memref<1x128xf32, #tpu.memory_space<vmem>>, vector<1x128xf32>
      %14 = vector.broadcast %13 : vector<1x128xf32> to vector<16x128xf32>
      %15 = arith.addf %12, %14 : vector<16x128xf32>
      %cst_13 = arith.constant dense<0.000000e+00> : vector<16xf32>
      %16 = vector.multi_reduction <add>, %15, %cst_13 [1] : vector<16x128xf32> to vector<16xf32>
      %17 = vector.shape_cast %16 : vector<16xf32> to vector<16x1xf32>
      %cst_14 = arith.constant 7.812500e-03 : f32
      %18 = vector.broadcast %cst_14 : f32 to vector<16x1xf32>
      %19 = arith.mulf %17, %18 : vector<16x1xf32>
      %20 = arith.mulf %15, %15 : vector<16x128xf32>
      %cst_15 = arith.constant dense<0.000000e+00> : vector<16xf32>
      %21 = vector.multi_reduction <add>, %20, %cst_15 [1] : vector<16x128xf32> to vector<16xf32>
      %22 = vector.shape_cast %21 : vector<16xf32> to vector<16x1xf32>
      %cst_16 = arith.constant 7.812500e-03 : f32
      %23 = vector.broadcast %cst_16 : f32 to vector<16x1xf32>
      %24 = arith.mulf %22, %23 : vector<16x1xf32>
      %25 = arith.mulf %19, %19 : vector<16x1xf32>
      %26 = arith.subf %24, %25 : vector<16x1xf32>
      %27 = vector.broadcast %19 : vector<16x1xf32> to vector<16x128xf32>
      %28 = arith.subf %15, %27 : vector<16x128xf32>
      %cst_17 = arith.constant 0.000000e+00 : f32
      %29 = vector.broadcast %cst_17 : f32 to vector<16x1xf32>
      %30 = arith.maximumf %26, %29 : vector<16x1xf32>
      %cst_18 = arith.constant 9.99999974E-6 : f32
      %31 = vector.broadcast %cst_18 : f32 to vector<16x1xf32>
      %32 = arith.addf %30, %31 : vector<16x1xf32>
      %33 = math.rsqrt %32 : vector<16x1xf32>
      %34 = vector.broadcast %33 : vector<16x1xf32> to vector<16x128xf32>
      %35 = arith.mulf %28, %34 : vector<16x128xf32>
      %c0_19 = arith.constant 0 : index
      %c0_20 = arith.constant 0 : index
      %36 = vector.load %arg4[%c0_19, %c0_20] : memref<1x128xf32, #tpu.memory_space<vmem>>, vector<1x128xf32>
      %37 = vector.broadcast %36 : vector<1x128xf32> to vector<16x128xf32>
      %38 = arith.mulf %35, %37 : vector<16x128xf32>
      %c0_21 = arith.constant 0 : index
      %c0_22 = arith.constant 0 : index
      %39 = vector.load %arg5[%c0_21, %c0_22] : memref<1x128xf32, #tpu.memory_space<vmem>>, vector<1x128xf32>
      %40 = vector.broadcast %39 : vector<1x128xf32> to vector<16x128xf32>
      %41 = arith.addf %38, %40 : vector<16x128xf32>
      %cst_23 = arith.constant 0.000000e+00 : f32
      %42 = vector.broadcast %cst_23 : f32 to vector<16x128xf32>
      %43 = arith.maximumf %41, %42 : vector<16x128xf32>
      %44 = arith.truncf %43 : vector<16x128xf32> to vector<16x128xbf16>
      %c0_24 = arith.constant 0 : index
      %c0_25 = arith.constant 0 : index
      %45 = vector.load %arg6[%c0_24, %c0_25] : memref<16x128xbf16, #tpu.memory_space<vmem>>, vector<16x128xbf16>
      tpu.vector_store %arg6[%c0_24, %c0_25], %44 {strides = array<i32>} : memref<16x128xbf16, #tpu.memory_space<vmem>>, vector<16x128xbf16>,
    } else {
    }
    return
  }
  func.func @transform_0(%arg0: i32) -> (i32, i32) {
    %c0_i32 = arith.constant 0 : i32
    %c0_i32_0 = arith.constant 0 : i32
    return %c0_i32, %arg0 : i32, i32
  }
  func.func @transform_1(%arg0: i32) -> (i32, i32) {
    %c0_i32 = arith.constant 0 : i32
    %c0_i32_0 = arith.constant 0 : i32
    return %arg0, %c0_i32 : i32, i32
  }
  func.func @transform_2(%arg0: i32) -> (i32, i32) {
    %c0_i32 = arith.constant 0 : i32
    %c0_i32_0 = arith.constant 0 : i32
    %c0_i32_1 = arith.constant 0 : i32
    return %c0_i32, %c0_i32_0 : i32, i32
  }
  func.func @transform_3(%arg0: i32) -> (i32, i32) {
    %c0_i32 = arith.constant 0 : i32
    %c0_i32_0 = arith.constant 0 : i32
    %c0_i32_1 = arith.constant 0 : i32
    return %c0_i32, %c0_i32_0 : i32, i32
  }
  func.func @transform_4(%arg0: i32) -> (i32, i32) {
    %c0_i32 = arith.constant 0 : i32
    %c0_i32_0 = arith.constant 0 : i32
    %c0_i32_1 = arith.constant 0 : i32
    return %c0_i32, %c0_i32_0 : i32, i32
  }
  func.func @transform_5(%arg0: i32) -> (i32, i32) {
    %c0_i32 = arith.constant 0 : i32
    %c0_i32_0 = arith.constant 0 : i32
    %c0_i32_1 = arith.constant 0 : i32
    return %c0_i32, %c0_i32_0 : i32, i32
  }
}

</mosaic_0001>

<bundles_post_ra>
// kernel: tpu_custom_call.1
= control target key start
LH: loop header
LB: loop body
LE: loop exit
PB: predicated region body
PF: predicated region fallthrough
CT: control target
= control target key end

     0   :  { %10 = vsyncpa [#allocation4], 0  ;;  %s1064_s0 = inlined_call_operand.hbm [shape: bf16[16,256], index: 0, kind: input, shape index: {}]   ;;  %s1065_s1 = inlined_call_operand.hbm [shape: bf16[256,128], index: 1, kind: input, shape index: {}]   ;;  %s1066_s2 = inlined_call_operand.vmem [shape: f32[1,128], index: 2, kind: input, shape index: {}]   ;;  %s1067_s3 = inlined_call_operand.vmem [shape: f32[1,128], index: 3, kind: input, shape index: {}]   ;;  %s1068_s4 = inlined_call_operand.vmem [shape: f32[1,128], index: 4, kind: input, shape index: {}]   ;;  %s1069_s5 = inlined_call_operand.hbm [shape: bf16[16,128], index: 5, kind: output, shape index: {}]  }
   0x1   :  { %12 = vsyncpa [#allocation4 + $0x1], 0 }
   0x2   :  { %13 = vsyncpa [#allocation7], 0 }
   0x3   :  { %15 = vsyncpa [#allocation7 + $0x1], 0 }
   0x4   :  { %16 = vsyncpa [#allocation5], 0  ;;  %s863_s18 = smov 0   ;;  %s865_s19 = smov 0  }
   0x5   :  { %s867_s20 = smov 0   ;;  %s869_s21 = smov 0  }
   0x6 LB: > { %s882_s22 = sadd.s32 4294967295, %s820_s21   ;;  %s885_s23 = sadd.s32 1, %s820_s21   ;;  %s820_s21 = sphi %s869_s21, %s1078_s21   ;;  %s816_s20 = sphi %s867_s20, %s1077_s20   ;;  %s812_s19 = sphi %s865_s19, %s1076_s19   ;;  %s808_s18 = sphi %s863_s18, %s1075_s18  }
   0x7   : > { %s26_s24 = ssub.s32 %s820_s21, %s885_s23  ;;  %s29_s25 = sadd.s32 1, %s816_s20 }
   0x8   : > { %p27_p0 = scmp.eq.s32.totalorder %s26_s24, 0  ;;  %p36_p1 = scmp.ne.s32.totalorder %s816_s20, %s812_s19 }
   0x9   : > { %p37_p2 = scmp.eq.s32.totalorder %s820_s21, 0  ;;  %p42_p3 = scmp.ne.s32.totalorder %s812_s19, %s808_s18 }
   0xa   : > { %s895_s26 = scalar_select %p27_p0, %s816_s20, %s29_s25  }
   0xb   : > { %p38_p4 = por %p37_p2, %p36_p1  ;;  %p43_p5 = scmp.eq.s32.totalorder %s882_s22, 0 }
   0xc   : > { %p635_p6 = scmp.lt.s32.totalorder %s820_s21, 2  ;;  %s904_s28 = sand.u32 1, %s816_s20  }
   0xd   : > { %p899_p7 = por %p43_p5, %p42_p3  ;;  %s555_s29 = sshll.u32 %s904_s28, 3 }
   0xe   : > { %s556_s30 = sshll.u32 %s820_s21, 6  ;;  %s189_s9 = scalar_lea.vmem [#allocation3], %s555_s29 }
   0xf   : > { %s1071_s27 = scalar_select %p899_p7, 1, 0 }
  0x10   : > { %s911_s8 = scalar_lea.hbm %s1064_s0, %s556_s30  ;;  %s195_s10 = sshll.u32 %s189_s9, 4  ;;  %s913_s10 = int_to_ptr.vmem [resolvable:$true] %s195_s10 }
  0x11   : > { %p915_p8 = pnand %p635_p6, %p38_p4  ;;  %s186_s12 = scalar_lea.sflag [#allocation4], %s904_s28 }
  0x12   : > { %s692_s13 = scalar_lea.hbm %s911_s8, 128  ;;  %s697_s16 = scalar_lea.hbm %s1064_s0, 256 }
  0x13   : > { %p693_p9 = scmp.ne.s32.totalorder %s911_s8, %s692_s13  ;;  %p694_p10 = pneg %p915_p8 }
  0x14   : > { %p698_p13 = scmp.lt.u32.totalorder %s911_s8, %s1064_s0  ;;  %p699_p0 = scmp.lt.u32.totalorder %s697_s16, %s692_s13 }
  0x15   : > { %p695_p11 = pnand %p694_p10, %p693_p9  ;;  %p701_p2 = scmp.lt.u32.totalorder %s692_s13, %s911_s8 }
  0x16   : > { %p700_p1 = por %p699_p0, %p698_p13 }
  0x17   : > { %p696_p12 = pneg %p695_p11 }
  0x18   : > { %p702_p3 = por %p701_p2, %p700_p1 }
  0x1a   : > { %p703_p4 = pnand %p702_p3, %p696_p12 }
  0x1c   : > { %706 = shalt.err (!%p703_p4)
}
  0x1d   : > { %s707_s24 = scalar_lea.vmem %s913_s10, 128  ;;  %s822_s25 = smov [#allocation3]  }
  0x1e   : > { %p708_p5 = scmp.ne.s32.totalorder %s913_s10, %s707_s24  ;;  %s712_s29 = sshll.u32 %s822_s25, 4  ;;  %s713_s29 = int_to_ptr.vmem [resolvable:$false] %s712_s29 }
  0x1f   : > { %s714_s30 = scalar_lea.vmem %s713_s29, 256  ;;  %p715_p11 = scmp.lt.s32.totalorder %s913_s10, %s713_s29 }
  0x20   : > { %p710_p6 = pnand %p708_p5, %p694_p10  ;;  %p716_p13 = scmp.lt.s32.totalorder %s714_s30, %s707_s24 }
  0x22   : > { %p711_p9 = pneg %p710_p6  ;;  %p717_p0 = por %p716_p13, %p715_p11 }
  0x24   : > { %p718_p1 = pnand %p717_p0, %p711_p9 }
  0x26   : > { %721 = shalt.err (!%p718_p1)
}
  0x27   : > { %s823_s6 = smov 128   ;;  %s824_s7 = smov 64  }
  0x28   : > { %s825_s9 = smov 4   ;;  %p560_p12 = scmp.ge.s32.totalorder %s820_s21, 1 }
  0x29   : > { %631 = dma.hbm_to_vmem [thread:$0]  (!%p915_p8), %s911_s8, 128, %s913_s10, %s186_s12, %s823_s6, %s824_s7, %s825_s9  }
  0x2a   : > { %p224_p2 = scmp.lt.s32.totalorder %s820_s21, 3  ;;  %s557_s13 = sshll.u32 %s904_s28, 6 }
  0x2b   : > { %s583_s15 = sshll.u32 %s820_s21, 10  ;;  %s209_s16 = scalar_lea.vmem [#allocation6], %s557_s13 }
  0x2c   : > { %p952_p3 = pnand %p560_p12, %p224_p2  ;;  %s216_s17 = sshll.u32 %s209_s16, 4  ;;  %s962_s17 = int_to_ptr.vmem [resolvable:$true] %s216_s17 }
  0x2d   : > { %s960_s25 = scalar_lea.hbm %s1065_s1, %s583_s15  ;;  %s206_s8 = scalar_lea.sflag [#allocation7], %s904_s28 }
  0x2e   : > { %s722_s10 = scalar_lea.hbm %s960_s25, 1024  ;;  %s727_s29 = scalar_lea.hbm %s1065_s1, 2048 }
  0x2f   : > { %p723_p4 = scmp.ne.s32.totalorder %s960_s25, %s722_s10  ;;  %p728_p9 = scmp.lt.u32.totalorder %s960_s25, %s1065_s1 }
  0x30   : > { %p729_p11 = scmp.lt.u32.totalorder %s727_s29, %s722_s10  ;;  %p731_p0 = scmp.lt.u32.totalorder %s722_s10, %s960_s25 }
  0x31   : > { %p725_p5 = pnand %p723_p4, %p694_p10 }
  0x32   : > { %p730_p13 = por %p729_p11, %p728_p9 }
  0x33   : > { %p726_p6 = pneg %p725_p5 }
  0x34   : > { %p732_p1 = por %p731_p0, %p730_p13 }
  0x36   : > { %p733_p12 = pnand %p732_p1, %p726_p6 }
  0x38   : > { %736 = shalt.err (!%p733_p12)
}
  0x39   : > { %s737_s13 = scalar_lea.vmem %s962_s17, 1024  ;;  %s826_s15 = smov [#allocation6]  }
  0x3a   : > { %p738_p2 = scmp.ne.s32.totalorder %s962_s17, %s737_s13  ;;  %s742_s16 = sshll.u32 %s826_s15, 4  ;;  %s743_s16 = int_to_ptr.vmem [resolvable:$false] %s742_s16 }
  0x3b   : > { %s744_s18 = scalar_lea.vmem %s743_s16, 2048  ;;  %p745_p7 = scmp.lt.s32.totalorder %s962_s17, %s743_s16 }
  0x3c   : > { %p740_p4 = pnand %p738_p2, %p694_p10  ;;  %p746_p9 = scmp.lt.s32.totalorder %s744_s18, %s737_s13 }
  0x3e   : > { %p741_p5 = pneg %p740_p4  ;;  %p747_p11 = por %p746_p9, %p745_p7 }
  0x40   : > { %p748_p13 = pnand %p747_p11, %p741_p5 }
  0x42   : > { %751 = shalt.err (!%p748_p13)
}
  0x43   : > { %634 = dma.hbm_to_vmem [thread:$0]  (!%p915_p8), %s960_s25, 1024, %s962_s17, %s206_s8, %s824_s7, %s824_s7, %s825_s9  }
  0x44   : > { %228 = sbr.rel (%p952_p3) target bundleno = 549 (0x225), region = 40  ;;  %s230_s24 = sand.u32 (!%p952_p3), 1, %s812_s19  }
  0x45   : > { %s561_s10 = sshll.u32 (!%p952_p3), %s230_s24, 3  ;;  %s231_s21 = scalar_lea.sflag (!%p952_p3), [#allocation4], %s230_s24 }
  0x46   : > { %s996_s12 = scalar_lea.vmem (!%p952_p3), [#allocation3], %s561_s10  ;;  %p1074_p7 = scmp.ne.s32.totalorder (!%p952_p3), %s1071_s27, 0 }
  0x4b   : > { %795 = dma.done.wait (%p1074_p7), %s231_s21, 128  }
  0x4c   : > { %797 = vsyncadd (%p1074_p7), %s231_s21, 4294967168  ;;  %s562_s28 = sshll.u32 %s230_s24, 6  ;;  %s240_s11 = scalar_lea.sflag [#allocation7], %s230_s24 }
  0x4d   : > { %s1002_s29 = scalar_lea.vmem [#allocation6], %s562_s28 }
  0x4e   : > { %799 = dma.done.wait (%p1074_p7), %s240_s11, 1024  }
  0x4f   : > { %801 = vsyncadd (%p1074_p7), %s240_s11, 4294966272  ;;  %p563_p8 = scmp.ne.s32.totalorder %s882_s22, 0 }
  0x50   : > { %v827_v0 = vmov (!%p563_p8), 0.0  }
  0x51   : > { %275 = sbr.rel (%p563_p8) target bundleno = 88 (0x58), region = 52  ;;  %276 = vst [vmem:[#allocation2] sm:$0xff] (!%p563_p8), %v827_v0  ;;  %277 = vst [vmem:[#allocation2 + $0x8] sm:$0xff] (!%p563_p8), %v827_v0 }
  0x58 PF: > { %v679_v1 = vld [vmem:[%s1002_s29] sm:$0xff]   ;;  %v828_v2 = vmov 0.0   ;;  %v680_v3 = vld [vmem:[%s1002_s29 + $0x8] sm:$0xff]   ;;  %vm829_vm0 = vmmov 0   ;;  %v681_v4 = vld [vmem:[%s1002_s29 + $0x10] sm:$0xff]   ;;  %p573_p10 = scmp.ne.s32.totalorder %s882_s22, 1 }
  0x59   : > { %600 = vmatprep.subr.bf16.mxu0 %v828_v2  ;;  %616 = vmatprep.mubr.msk.bf16.mxu0 %vm829_vm0, %v828_v2  ;;  %v682_v5 = vld [vmem:[%s1002_s29 + $0x18] sm:$0xff]   ;;  %v683_v6 = vld [vmem:[%s1002_s29 + $0x20] sm:$0xff]   ;;  %v684_v7 = vld [vmem:[%s1002_s29 + $0x28] sm:$0xff]  }
  0x5a   : > { %601 = vmatpush3.bf16.msra.mxu0 %v679_v1  ;;  %v685_v8 = vld [vmem:[%s1002_s29 + $0x30] sm:$0xff]   ;;  %v686_v9 = vld [vmem:[%s1002_s29 + $0x38] sm:$0xff]   ;;  %v278_v11 = vld [vmem:[#allocation2] sm:$0xff] }
  0x5b   : > { %602 = vmatprep.subr.bf16.mxu0 %v828_v2  ;;  %v687_v10 = vld [vmem:[%s996_s12] sm:$0xff]   ;;  %v279_v13 = vld [vmem:[#allocation2 + $0x8] sm:$0xff]  ;;  %v574_v20 = vld [vmem:[%s1066_s2] ss:$0 sm:$0xff] (!%p573_p10) }
  0x5c   : > { %v575_v44 = vld [vmem:[%s1067_s3] ss:$0 sm:$0xff] (!%p573_p10) }
  0x5d   : > { %v576_v49 = vld [vmem:[%s1068_s4] ss:$0 sm:$0xff] (!%p573_p10) }
  0x5e   : > { %603 = vmatpush3.bf16.msra.mxu0 %v680_v3 }
  0x5f   : > { %604 = vmatprep.subr.bf16.mxu0 %v828_v2 }
  0x62   : > { %605 = vmatpush3.bf16.msra.mxu0 %v681_v4 }
  0x63   : > { %606 = vmatprep.subr.bf16.mxu0 %v828_v2 }
  0x66   : > { %607 = vmatpush3.bf16.msra.mxu0 %v682_v5 }
  0x67   : > { %608 = vmatprep.subr.bf16.mxu0 %v828_v2 }
  0x6a   : > { %609 = vmatpush3.bf16.msra.mxu0 %v683_v6 }
  0x6b   : > { %610 = vmatprep.subr.bf16.mxu0 %v828_v2 }
  0x6e   : > { %611 = vmatpush3.bf16.msra.mxu0 %v684_v7 }
  0x6f   : > { %612 = vmatprep.subr.bf16.mxu0 %v828_v2 }
  0x72   : > { %613 = vmatpush3.bf16.msra.mxu0 %v685_v8 }
  0x73   : > { %614 = vmatprep.subr.bf16.mxu0 %v828_v2 }
  0x76   : > { %615 = vmatpush3.bf16.msra.mxu0 %v686_v9 }
  0x79   : > { %617 = vmatmul.mubr.bf16.vlgmr.msra.gmra.mrb[0].mxu0 %v687_v10 }
 0x14b   : > { %400 = sbr.rel (%p573_p10) target bundleno = 523 (0x20b), region = 56 }
 0x14c   : > { %v386_v12 = vpop.f32.mrb[0].mxu0 }
 0x14d   : > { %v393_v14 = vadd.f32 %v386_v12, %v278_v11  ;;  %v618_v15 = vpop.f32.mrb[1].mxu0 }
 0x14e   : > { %v389_v16 = vpop.f32.mrb[2].mxu0 }
 0x14f   : > { %395 = vst [vmem:[#allocation2] sm:$0xff] %v393_v14  ;;  %v394_v17 = vadd.f32 %v389_v16, %v279_v13  ;;  %v619_v18 = vpop.f32.mrb[3].mxu0 }
 0x151   : > { %396 = vst [vmem:[#allocation2 + $0x8] sm:$0xff] %v394_v17 }
 0x156   : > { %v401_v19 = vld [vmem:[#allocation2] sm:$0xff] }
 0x157   : > { %v410_v22 = vadd.f32 %v574_v20, %v401_v19 }
 0x158   : > { %v402_v21 = vld [vmem:[#allocation2 + $0x8] sm:$0xff] }
 0x159   : > { %v411_v23 = vadd.f32 %v574_v20, %v402_v21  ;;  %412 = vadd.xlane.f32.xlu0 %v410_v22  ;;  %v418_v24 = vmul.f32 %v410_v22, %v410_v22 }
 0x15b   : > { %420 = vadd.xlane.f32.xlu1 %v418_v24  ;;  %v419_v25 = vmul.f32 %v411_v23, %v411_v23 }
 0x15d   : > { %414 = vadd.xlane.f32.xlu0 %v411_v23 }
 0x15f   : > { %422 = vadd.xlane.f32.xlu1 %v419_v25 }
 0x1e6   : > { %v413_v26 = vpop.xlane.xlu0 %412 }
 0x1e7   : > { %v416_v27 = vmul.f32 0.0078125, %v413_v26 }
 0x1e8   : > { %v421_v28 = vpop.xlane.xlu1 %420 }
 0x1e9   : > { %v426_v29 = vmul.f32 %v416_v27, %v416_v27  ;;  %v424_v30 = vmul.f32 0.0078125, %v421_v28  ;;  %v430_v42 = vsub.f32 %v410_v22, %v416_v27 }
 0x1ea   : > { %v415_v31 = vpop.xlane.xlu0 %414 }
 0x1eb   : > { %v428_v32 = vsub.f32 %v424_v30, %v426_v29  ;;  %v417_v33 = vmul.f32 0.0078125, %v415_v31 }
 0x1ec   : > { %v423_v34 = vpop.xlane.xlu1 %422 }
 0x1ed   : > { %v432_v35 = vmax.f32 %v428_v32, 0.0  ;;  %v427_v36 = vmul.f32 %v417_v33, %v417_v33  ;;  %v425_v37 = vmul.f32 0.0078125, %v423_v34  ;;  %v431_v47 = vsub.f32 %v411_v23, %v417_v33 }
 0x1ef   : > { %v434_v38 = vadd.f32 1e-05, %v432_v35  ;;  %v429_v39 = vsub.f32 %v425_v37, %v427_v36 }
 0x1f1   : > { %688 = vrsqrt.f32 %v434_v38  ;;  %v433_v40 = vmax.f32 %v429_v39, 0.0 }
 0x1f3   : > { %v435_v41 = vadd.f32 1e-05, %v433_v40 }
 0x1f5   : > { %690 = vrsqrt.f32 %v435_v41 }
 0x1fb   : > { %v689_v43 = vpop.eup %688 }
 0x1fc   : > { %v438_v45 = vmul.f32 %v689_v43, %v430_v42 }
 0x1fe   : > { %v447_v46 = vmul.f32 %v575_v44, %v438_v45 }
 0x1ff   : > { %v691_v48 = vpop.eup %690 }
 0x200   : > { %v439_v50 = vmul.f32 %v691_v48, %v431_v47  ;;  %v456_v51 = vadd.f32 %v576_v49, %v447_v46 }
 0x202   : > { %v448_v52 = vmul.f32 %v575_v44, %v439_v50  ;;  %v458_v54 = vmax.f32 %v456_v51, 0.0 }
 0x204   : > { %v457_v53 = vadd.f32 %v576_v49, %v448_v52 }
 0x206   : > { %v459_v55 = vmax.f32 %v457_v53, 0.0 }
 0x208   : > { %v589_v56 = vpack.c.bf16 %v459_v55, %v458_v54 }
 0x20a   : > { %590 = vst [vmem:[#allocation8] sm:$0xff] %v589_v56  }
 0x20b PF: > { %p636_p3 = scmp.eq.s32.totalorder %s882_s22, 1  ;;  %s830_s8 = smov [#allocation8]  }
 0x20c   : > { %s476_s30 = sshll.u32 %s830_s8, 4  ;;  %s477_s30 = int_to_ptr.vmem [resolvable:$true] %s476_s30 }
 0x20d   : > { %s752_s6 = scalar_lea.vmem %s477_s30, 128  ;;  %p759_p12 = scmp.lt.s32.totalorder %s477_s30, %s477_s30 }
 0x20e   : > { %p753_p6 = scmp.ne.s32.totalorder %s477_s30, %s752_s6  ;;  %p760_p2 = scmp.lt.s32.totalorder %s752_s6, %s752_s6 }
 0x210   : > { %p754_p0 = pnand %p753_p6, %p636_p3  ;;  %p761_p4 = por %p760_p2, %p759_p12 }
 0x212   : > { %p755_p1 = pneg %p754_p0 }
 0x214   : > { %p762_p5 = pnand %p761_p4, %p755_p1 }
 0x216   : > { %765 = shalt.err (!%p762_p5)
}
 0x217   : > { %s766_s16 = scalar_lea.hbm %s1069_s5, 128 }
 0x218   : > { %p767_p9 = scmp.ne.s32.totalorder %s1069_s5, %s766_s16  ;;  %p772_p7 = scmp.lt.u32.totalorder %s766_s16, %s1069_s5 }
 0x21a   : > { %p768_p11 = pnand %p767_p9, %p636_p3 }
 0x21c   : > { %p769_p13 = pneg %p768_p11 }
 0x21e   : > { %p774_p8 = pnand %p772_p7, %p769_p13 }
 0x220   : > { %777 = shalt.err (!%p774_p8)
}
 0x221   : > { %s831_s12 = smov 64   ;;  %s832_s28 = smov 4  }
 0x222   : > { %625 = dma.vmem_to_hbm [thread:$0]  (%p636_p3), %s477_s30, 128, %s1069_s5, [#allocation5], %s831_s12, %s831_s12, %s832_s28  }
 0x223   : > { %803 = dma.done.wait (%p636_p3), [#allocation5], 128  }
 0x224   : > { %805 = vsyncadd (%p636_p3), [#allocation5], 4294967168 }
 0x225 PF: > { %p19_p10 = scmp.ge.s32.totalorder %s885_s23, 4   ;;  %s1075_s18 = smov %s812_s19 }
 0x226   : > { %s1076_s19 = smov %s816_s20  ;;  %s1077_s20 = smov %s895_s26 }
 0x227   : > { %s1078_s21 = smov %s885_s23  ;;  %21 = sbr.rel (!%p19_p10) target bundleno = 6 (0x6), region = 98 }
 0x22e   :  { %492 = vsyncpa [#allocation4], 1 }
 0x22f   :  { %494 = vsyncpa [#allocation4 + $0x1], 1 }
 0x230   :  { %495 = vsyncpa [#allocation7], 1 }
 0x231   :  { %497 = vsyncpa [#allocation7 + $0x1], 1 }
 0x232   :  { %498 = vsyncpa [#allocation5], 1 }
 0x233   :  { %500 = vsyncpa [#allocation5 + $0x1], 1 }

</bundles_post_ra>
